<compile_context>
chip_gen: v6e
topology: v6e:2x2x1
jax: 0.10.0
libtpu: 0.0.40
codegen_flags: <defaults>
</compile_context>

<pallas_src>
import jax
import jax.numpy as jnp
from jax.experimental import pallas as pl
from jax.experimental.pallas import tpu as pltpu

# ---- fixed module parameters (exactly as in FullyConnectedANN.__init__) ----
W1 = ((1.0, 0.0), (0.0, -1.0), (-2.0, 2.0))   # (3, 2)
B1 = (0.0, 2.0, -1.0)                          # (3,)
W2 = (1.0, -2.0, 3.0)                          # (1, 3)
B2 = 1.0                                       # (1,)

LANES = 128        # vreg lane width
ROW_TILE = 8       # sublane rows per grid step -> 8 * 128 = 1024 samples / step


def fc_ann_kernel(x_ref, out_ref):
    """Batched forward: x_ref (2, ROW_TILE, 128) -> out_ref (ROW_TILE, 128).

    x_ref[k] holds input feature k for a (ROW_TILE, 128) slab of samples.
    Weights are compile-time immediates; everything is lane-dense VPU work.
    """
    f0 = x_ref[0]                              # (ROW_TILE, 128)
    f1 = x_ref[1]                              # (ROW_TILE, 128)

    # Layer 1: relu(W1 @ x + B1), unrolled over the 3 hidden units.
    h0 = jnp.maximum(W1[0][0] * f0 + W1[0][1] * f1 + B1[0], 0.0)
    h1 = jnp.maximum(W1[1][0] * f0 + W1[1][1] * f1 + B1[1], 0.0)
    h2 = jnp.maximum(W1[2][0] * f0 + W1[2][1] * f1 + B1[2], 0.0)

    # Layer 2: W2 @ h + B2 -> one scalar per sample, stored lane-dense.
    out_ref[...] = W2[0] * h0 + W2[1] * h1 + W2[2] * h2 + B2


def fc_ann_forward_batched(x_batch):
    """Run the module forward for a batch of inputs: (B, 2) -> (B,) f32."""
    x_batch = jnp.asarray(x_batch, jnp.float32)
    b = x_batch.shape[0]

    samples_per_tile = ROW_TILE * LANES
    b_pad = pl.cdiv(max(b, 1), samples_per_tile) * samples_per_tile

    # Pad the batch and pack lane-major: (2, rows, 128), feature index first.
    x = jnp.zeros((b_pad, 2), jnp.float32).at[:b].set(x_batch)
    rows = b_pad // LANES
    x_packed = x.T.reshape(2, rows, LANES)

    out = pl.pallas_call(
        fc_ann_kernel,
        out_shape=jax.ShapeDtypeStruct((rows, LANES), jnp.float32),
        grid=(rows // ROW_TILE,),
        in_specs=[pl.BlockSpec((2, ROW_TILE, LANES), lambda i: (0, i, 0))],
        out_specs=pl.BlockSpec((ROW_TILE, LANES), lambda i: (i, 0)),
        compiler_params=pltpu.CompilerParams(
            dimension_semantics=("parallel",)),
    )(x_packed)

    return out.reshape(b_pad)[:b]


def fc_ann_forward(x0):
    """Module-faithful forward: x0 shape (2,) -> output shape (1,)."""
    out = fc_ann_forward_batched(jnp.asarray(x0, jnp.float32).reshape(1, 2))
    return out.reshape(1)


def fc_ann_reference(x_batch):
    """Plain-jnp reference of the batched forward (returns (B,))."""
    w1 = jnp.array(W1, jnp.float32)
    b1 = jnp.array(B1, jnp.float32)
    w2 = jnp.array([W2], jnp.float32)
    b2 = jnp.array([B2], jnp.float32)
    h = jnp.maximum(x_batch @ w1.T + b1, 0.0)
    return (h @ w2.T + b2).reshape(-1)


if __name__ == "__main__":
    # 1) The exact example from the module source: x0 = [1, 2] -> 5.0
    x0 = jnp.array([1.0, 2.0], dtype=jnp.float32)
    out_single = jax.block_until_ready(fc_ann_forward(x0))
    assert out_single.shape == (1,), out_single.shape
    assert jnp.allclose(out_single, jnp.array([5.0]), atol=1e-5), out_single

    # 2) Batched inputs so the per-call launch/DMA overhead is amortized
    #    (2048 samples = two 1024-sample grid steps, lane-dense (16,128) output).
    key = jax.random.PRNGKey(0)
    x_batch = jax.random.normal(key, (2048, 2), dtype=jnp.float32)
    out_batch = jax.block_until_ready(fc_ann_forward_batched(x_batch))
    ref_batch = fc_ann_reference(x_batch)
    assert out_batch.shape == (2048,), out_batch.shape
    assert jnp.allclose(out_batch, ref_batch, atol=1e-5, rtol=1e-5), (
        float(jnp.max(jnp.abs(out_batch - ref_batch))))

    print("KERNEL_OK")
</pallas_src>

<mosaic_0001>
module attributes {stable_mosaic.version = 11 : i64} {
  func.func @fc_ann_kernel(%arg0: i32, %arg1: memref<2x8x128xf32, #tpu.memory_space<vmem>>, %arg2: memref<8x128xf32, #tpu.memory_space<vmem>>) attributes {dimension_semantics = [#tpu.dimension_semantics<parallel>], iteration_bounds = array<i64: 1>, scalar_prefetch = 0 : i64, scratch_operands = 0 : i64, tpu.core_type = #tpu.core_type<tc>, window_params = [{transform_indices = @transform_0, window_bounds = array<i64: 2, 8, 128>}, {transform_indices = @transform_1, window_bounds = array<i64: 8, 128>}]} {
    %c0 = arith.constant 0 : index
    %c0_0 = arith.constant 0 : index
    %c0_1 = arith.constant 0 : index
    %0 = vector.load %arg1[%c0, %c0_0, %c0_1] : memref<2x8x128xf32, #tpu.memory_space<vmem>>, vector<1x8x128xf32>
    %1 = vector.shape_cast %0 : vector<1x8x128xf32> to vector<8x128xf32>
    %c1 = arith.constant 1 : index
    %c0_2 = arith.constant 0 : index
    %c0_3 = arith.constant 0 : index
    %2 = vector.load %arg1[%c1, %c0_2, %c0_3] : memref<2x8x128xf32, #tpu.memory_space<vmem>>, vector<1x8x128xf32>
    %3 = vector.shape_cast %2 : vector<1x8x128xf32> to vector<8x128xf32>
    %cst = arith.constant 1.000000e+00 : f32
    %4 = vector.broadcast %cst : f32 to vector<8x128xf32>
    %5 = arith.mulf %4, %1 : vector<8x128xf32>
    %cst_4 = arith.constant 0.000000e+00 : f32
    %6 = vector.broadcast %cst_4 : f32 to vector<8x128xf32>
    %7 = arith.mulf %6, %3 : vector<8x128xf32>
    %8 = arith.addf %5, %7 : vector<8x128xf32>
    %cst_5 = arith.constant 0.000000e+00 : f32
    %9 = vector.broadcast %cst_5 : f32 to vector<8x128xf32>
    %10 = arith.addf %8, %9 : vector<8x128xf32>
    %cst_6 = arith.constant 0.000000e+00 : f32
    %11 = vector.broadcast %cst_6 : f32 to vector<8x128xf32>
    %12 = arith.maximumf %10, %11 : vector<8x128xf32>
    %cst_7 = arith.constant 0.000000e+00 : f32
    %13 = vector.broadcast %cst_7 : f32 to vector<8x128xf32>
    %14 = arith.mulf %13, %1 : vector<8x128xf32>
    %cst_8 = arith.constant -1.000000e+00 : f32
    %15 = vector.broadcast %cst_8 : f32 to vector<8x128xf32>
    %16 = arith.mulf %15, %3 : vector<8x128xf32>
    %17 = arith.addf %14, %16 : vector<8x128xf32>
    %cst_9 = arith.constant 2.000000e+00 : f32
    %18 = vector.broadcast %cst_9 : f32 to vector<8x128xf32>
    %19 = arith.addf %17, %18 : vector<8x128xf32>
    %cst_10 = arith.constant 0.000000e+00 : f32
    %20 = vector.broadcast %cst_10 : f32 to vector<8x128xf32>
    %21 = arith.maximumf %19, %20 : vector<8x128xf32>
    %cst_11 = arith.constant -2.000000e+00 : f32
    %22 = vector.broadcast %cst_11 : f32 to vector<8x128xf32>
    %23 = arith.mulf %22, %1 : vector<8x128xf32>
    %cst_12 = arith.constant 2.000000e+00 : f32
    %24 = vector.broadcast %cst_12 : f32 to vector<8x128xf32>
    %25 = arith.mulf %24, %3 : vector<8x128xf32>
    %26 = arith.addf %23, %25 : vector<8x128xf32>
    %cst_13 = arith.constant -1.000000e+00 : f32
    %27 = vector.broadcast %cst_13 : f32 to vector<8x128xf32>
    %28 = arith.addf %26, %27 : vector<8x128xf32>
    %cst_14 = arith.constant 0.000000e+00 : f32
    %29 = vector.broadcast %cst_14 : f32 to vector<8x128xf32>
    %30 = arith.maximumf %28, %29 : vector<8x128xf32>
    %cst_15 = arith.constant 1.000000e+00 : f32
    %31 = vector.broadcast %cst_15 : f32 to vector<8x128xf32>
    %32 = arith.mulf %31, %12 : vector<8x128xf32>
    %cst_16 = arith.constant -2.000000e+00 : f32
    %33 = vector.broadcast %cst_16 : f32 to vector<8x128xf32>
    %34 = arith.mulf %33, %21 : vector<8x128xf32>
    %35 = arith.addf %32, %34 : vector<8x128xf32>
    %cst_17 = arith.constant 3.000000e+00 : f32
    %36 = vector.broadcast %cst_17 : f32 to vector<8x128xf32>
    %37 = arith.mulf %36, %30 : vector<8x128xf32>
    %38 = arith.addf %35, %37 : vector<8x128xf32>
    %cst_18 = arith.constant 1.000000e+00 : f32
    %39 = vector.broadcast %cst_18 : f32 to vector<8x128xf32>
    %40 = arith.addf %38, %39 : vector<8x128xf32>
    %c0_19 = arith.constant 0 : index
    %c0_20 = arith.constant 0 : index
    %41 = vector.load %arg2[%c0_19, %c0_20] : memref<8x128xf32, #tpu.memory_space<vmem>>, vector<8x128xf32>
    tpu.vector_store %arg2[%c0_19, %c0_20], %40 {strides = array<i32>} : memref<8x128xf32, #tpu.memory_space<vmem>>, vector<8x128xf32>,
    return
  }
  func.func @transform_0(%arg0: i32) -> (i32, i32, i32) {
    %c0_i32 = arith.constant 0 : i32
    %c0_i32_0 = arith.constant 0 : i32
    %c0_i32_1 = arith.constant 0 : i32
    return %c0_i32, %arg0, %c0_i32_0 : i32, i32, i32
  }
  func.func @transform_1(%arg0: i32) -> (i32, i32) {
    %c0_i32 = arith.constant 0 : i32
    %c0_i32_0 = arith.constant 0 : i32
    return %arg0, %c0_i32 : i32, i32
  }
}

</mosaic_0001>

<bundles_post_ra>
// kernel: tpu_custom_call.1
= control target key start
LH: loop header
LB: loop body
LE: loop exit
PB: predicated region body
PF: predicated region fallthrough
CT: control target
= control target key end

     0   :  { %6 = vsyncpa [#allocation3], 0  ;;  %s129_s0 = inlined_call_operand.hbm [shape: f32[2,8,128], index: 0, kind: input, shape index: {}]   ;;  %s130_s1 = inlined_call_operand.hbm [shape: f32[8,128], index: 1, kind: output, shape index: {}]  }
   0x1   :  { %7 = vsyncpa [#allocation4], 0  ;;  %s109_s6 = smov [#allocation2]  }
   0x2   :  { %s13_s7 = sshll.u32 %s109_s6, 4  ;;  %s14_s7 = int_to_ptr.vmem [resolvable:$true] %s13_s7 }
   0x3   :  { %s73_s8 = scalar_lea.vmem %s14_s7, 256  ;;  %p78_p1 = scmp.lt.s32.totalorder %s14_s7, %s14_s7 }
   0x4   :  { %p74_p0 = scmp.ne.s32.totalorder %s14_s7, %s73_s8  ;;  %p79_p2 = scmp.lt.s32.totalorder %s73_s8, %s73_s8 }
   0x6   :  { %p80_p3 = por %p79_p2, %p78_p1 }
   0x8   :  { %p81_p4 = pnand %p80_p3, %p74_p0 }
   0xa   :  { %84 = shalt.err (!%p81_p4)
}
   0xb   :  { %s110_s9 = smov 128   ;;  %s111_s10 = smov 8  }
   0xc   :  { %19 = dma.hbm_to_vmem [thread:$0]  %s129_s0, 256, %s14_s7, [#allocation3], %s110_s9, %s110_s9, %s111_s10  }
   0xd   :  { %105 = dma.done.wait [#allocation3], 256  }
   0xe   :  { %106 = vsyncadd [#allocation3], 4294967040  ;;  %v23_v0 = vld [vmem:[#allocation2] sm:$0xff]  ;;  %v25_v1 = vld [vmem:[#allocation2 + $0x8] sm:$0xff]  ;;  %s112_s0 = smov [#allocation5]  }
   0xf   :  { %v26_v2 = vmul.f32 0.0, %v25_v1  ;;  %v30_v3 = vmul.f32 0.0, %v23_v0  ;;  %v31_v4 = vmul.f32 -1.0, %v25_v1  ;;  %v35_v5 = vmul.f32 -2.0, %v23_v0  ;;  %s52_s13 = sshll.u32 %s112_s0, 4  ;;  %s53_s13 = int_to_ptr.vmem [resolvable:$true] %s52_s13 }
  0x10   :  { %v36_v6 = vmul.f32 2.0, %v25_v1  ;;  %s85_s14 = scalar_lea.vmem %s53_s13, 128  ;;  %p90_p6 = scmp.lt.s32.totalorder %s53_s13, %s53_s13 }
  0x11   :  { %v27_v7 = vadd.f32 %v26_v2, %v23_v0  ;;  %v32_v8 = vadd.f32 %v31_v4, %v30_v3  ;;  %p86_p5 = scmp.ne.s32.totalorder %s53_s13, %s85_s14  ;;  %p91_p7 = scmp.lt.s32.totalorder %s85_s14, %s85_s14 }
  0x12   :  { %v37_v9 = vadd.f32 %v36_v6, %v35_v5 }
  0x13   :  { %v33_v10 = vadd.f32 2.0, %v32_v8  ;;  %v29_v12 = vmax.f32 %v27_v7, 0.0  ;;  %p92_p8 = por %p91_p7, %p90_p6 }
  0x14   :  { %v38_v11 = vadd.f32 -1.0, %v37_v9 }
  0x15   :  { %v34_v13 = vmax.f32 %v33_v10, 0.0  ;;  %p93_p9 = pnand %p92_p8, %p86_p5 }
  0x16   :  { %v39_v14 = vmax.f32 %v38_v11, 0.0 }
  0x17   :  { %v40_v15 = vmul.f32 -2.0, %v34_v13 }
  0x18   :  { %v42_v16 = vmul.f32 3.0, %v39_v14 }
  0x19   :  { %v41_v17 = vadd.f32 %v40_v15, %v29_v12 }
  0x1b   :  { %v43_v18 = vadd.f32 %v42_v16, %v41_v17 }
  0x1d   :  { %v44_v19 = vadd.f32 1.0, %v43_v18 }
  0x1f   :  { %45 = vst [vmem:[#allocation5] sm:$0xff] %v44_v19 }
  0x20   :  { %96 = shalt.err (!%p93_p9)
}
  0x21   :  { %55 = dma.vmem_to_hbm [thread:$0]  %s53_s13, 128, %s130_s1, [#allocation4]  }
  0x22   :  { %107 = dma.done.wait [#allocation4], 128  }
  0x23   :  { %108 = vsyncadd [#allocation4], 4294967168 }
  0x24   :  { %59 = vsyncpa [#allocation3], 1 }
  0x25   :  { %60 = vsyncpa [#allocation4], 1 }

</bundles_post_ra>
